<compile_context>
chip_gen: v7x
topology: tpu7x:2x2x1
jax: 0.10.0
libtpu: 0.0.40
codegen_flags: <defaults>
</compile_context>

<pallas_src>
import math

import jax
import jax.numpy as jnp
from jax import lax
from jax.experimental import pallas as pl
from jax.experimental.pallas import tpu as pltpu

VTH = 0.2    # spiking threshold
TAU = 0.25   # membrane leak factor
AA = 0.5     # surrogate-gradient half-width (backward only; unused here)

_LANE = 128   # vreg lane width
_SUB = 8      # f32 sublanes per vreg
_CHUNK = 32   # sublanes of carried state per inner chunk (4 f32 vregs -> ILP)


def _round_up(x, m):
    return ((x + m - 1) // m) * m


def _lif_kernel(x_ref, o_ref):
    """x_ref, o_ref: (T, TR, 128) VMEM tiles, time-major."""
    n_steps, tr, _ = x_ref.shape
    tau = jnp.float32(TAU)
    vth = jnp.float32(VTH)

    # Widest chunk that tiles the row block evenly: 32 sublanes gives the
    # unrolled (serial) time scan 4 independent vregs of state so the VALU
    # slots stay full; fall back to a single (8,128) vreg otherwise.
    ch = _CHUNK if tr % _CHUNK == 0 else _SUB

    @pl.loop(0, tr // ch)
    def _(j):
        r0 = pl.multiple_of(j * ch, ch)

        def step(t, carry):
            u, spiked = carry
            x_t = x_ref[t, pl.ds(r0, ch), :].astype(jnp.float32)
            # u_t = tau*u*(1-o) + x  ==  where(o, x, tau*u + x)   (o is 0/1)
            u = jnp.where(spiked, x_t, tau * u + x_t)
            spiked = u > vth                       # Heaviside spike (forward)
            o_ref[t, pl.ds(r0, ch), :] = spiked.astype(o_ref.dtype)
            return (u, spiked)

        u0 = jnp.zeros((ch, _LANE), jnp.float32)
        s0 = jnp.zeros((ch, _LANE), jnp.bool_)
        # TODO(synk): SpikeAct's surrogate gradient (backward) has no forward
        # equivalent here; this kernel implements the forward pass only.
        lax.fori_loop(0, n_steps, step, (u0, s0), unroll=min(int(n_steps), 8))


def lif_spike_forward_time_major(x_tm, *, row_block=2048,
                                 vmem_budget_bytes=32 * 1024 * 1024,
                                 out_dtype=None):
    """LIF forward on a TIME-MAJOR input.

    x_tm: (T, ...) array (time on the FIRST axis).  Returns spikes of the same
    shape (dtype `out_dtype`, default = input dtype).  This is the
    zero-transpose fast path; keep SNN activations time-major between layers.
    """
    T = x_tm.shape[0]
    batch_shape = x_tm.shape[1:]
    M = math.prod(batch_shape) if batch_shape else 1
    out_dtype = x_tm.dtype if out_dtype is None else jnp.dtype(out_dtype)
    in_itemsize = jnp.dtype(x_tm.dtype).itemsize
    out_itemsize = jnp.dtype(out_dtype).itemsize

    # Flatten batch onto lanes; pad only to one full (8,128) row group (tiny).
    M_pad = _round_up(max(M, 1), _SUB * _LANE)
    x2d = x_tm.reshape(T, M)
    if M_pad != M:
        x2d = jnp.pad(x2d, ((0, 0), (0, M_pad - M)))
    R_pad = M_pad // _LANE
    x3d = x2d.reshape(T, R_pad, _LANE)

    # ---- row-tile selection -------------------------------------------------
    # Pipelined VMEM footprint: (input + output) tiles, each double-buffered.
    per_row_bytes = 2 * T * _LANE * (in_itemsize + out_itemsize)
    tr_budget = max(_SUB, (vmem_budget_bytes // per_row_bytes) // _SUB * _SUB)
    tr = min(row_block, R_pad, tr_budget)
    # Keep >= 2 roughly balanced blocks so the "parallel" row axis can shard
    # across both TensorCores on v7x (harmless elsewhere).
    if R_pad > _SUB:
        tr = min(tr, _round_up(pl.cdiv(R_pad, 2), _SUB))
    # Prefer a multiple of the in-kernel chunk so the inner loop tiles evenly.
    if tr >= _CHUNK:
        tr = (tr // _CHUNK) * _CHUNK
    tr = max(_SUB, (tr // _SUB) * _SUB)

    grid = (pl.cdiv(R_pad, tr),)           # last block may be partial (masked)
    footprint = tr * per_row_bytes
    vmem_limit = int(min(max(footprint + (4 << 20), 16 << 20), 64 << 20))

    out3d = pl.pallas_call(
        _lif_kernel,
        out_shape=jax.ShapeDtypeStruct((T, R_pad, _LANE), out_dtype),
        grid_spec=pltpu.PrefetchScalarGridSpec(
            num_scalar_prefetch=0,
            grid=grid,
            in_specs=[pl.BlockSpec((T, tr, _LANE), lambda i: (0, i, 0))],
            out_specs=pl.BlockSpec((T, tr, _LANE), lambda i: (0, i, 0)),
        ),
        compiler_params=pltpu.CompilerParams(
            dimension_semantics=("parallel",),
            vmem_limit_bytes=vmem_limit,
        ),
    )(x3d)

    out2d = out3d.reshape(T, M_pad)
    if M_pad != M:
        out2d = out2d[:, :M]
    return out2d.reshape((T,) + batch_shape)


def lif_spike_forward(x, **kwargs):
    """Drop-in LIFSpike.forward: x has time on the LAST axis (..., T).

    NOTE: this compatibility path pays one transpose before and one after the
    kernel; prefer `lif_spike_forward_time_major` when the surrounding SNN
    pipeline can keep activations time-major.
    """
    T = x.shape[-1]
    batch_shape = x.shape[:-1]
    x_tm = jnp.moveaxis(x.reshape(-1, T), -1, 0)          # (T, M)
    out_tm = lif_spike_forward_time_major(x_tm, **kwargs)  # (T, M)
    return jnp.moveaxis(out_tm, 0, -1).reshape(batch_shape + (T,))


def lif_spike_reference(x):
    """Plain-JAX reference mirroring the PyTorch LIFSpike loop ((..., T) input)."""
    T = x.shape[-1]
    u = jnp.zeros(x.shape[:-1], dtype=jnp.float32)
    o = jnp.zeros(x.shape[:-1], dtype=jnp.float32)
    outs = []
    for t in range(T):
        u = jnp.float32(TAU) * u * (1.0 - o) + x[..., t].astype(jnp.float32)
        o = (u > jnp.float32(VTH)).astype(jnp.float32)
        outs.append(o)
    return jnp.stack(outs, axis=-1).astype(x.dtype)


if __name__ == "__main__":
    key = jax.random.PRNGKey(0)

    # Shape consistent with the SNN module's conv activations: (N, C, H, W, T).
    N, C, H, W, T = 2, 4, 16, 16, 8
    x = jax.random.normal(key, (N, C, H, W, T), dtype=jnp.float32)
    ref = lif_spike_reference(x)

    # 1) Drop-in (..., T) interface.
    out = jax.block_until_ready(lif_spike_forward(x))
    assert out.shape == x.shape and out.dtype == x.dtype
    assert bool(jnp.all((out == 0.0) | (out == 1.0)))
    assert jnp.allclose(out, ref, atol=1e-6, rtol=0)

    # 2) Time-major fast path (no wrapper transposes).
    x_tm = jnp.moveaxis(x, -1, 0)
    out_tm = jax.block_until_ready(lif_spike_forward_time_major(x_tm))
    assert out_tm.shape == x_tm.shape
    assert jnp.allclose(jnp.moveaxis(out_tm, 0, -1), ref, atol=1e-6, rtol=0)

    # 3) Ragged batch size (exercises the minimal-pad + partial-block path).
    x_odd = jax.random.normal(jax.random.PRNGKey(1), (3, 5, 7, T), dtype=jnp.float32)
    out_odd = jax.block_until_ready(lif_spike_forward(x_odd))
    assert out_odd.shape == x_odd.shape
    assert jnp.allclose(out_odd, lif_spike_reference(x_odd), atol=1e-6, rtol=0)

    print("KERNEL_OK")
</pallas_src>

<mosaic_0001>
module attributes {stable_mosaic.version = 11 : i64} {
  func.func @_lif_kernel(%arg0: i32, %arg1: memref<8x8x128xf32, #tpu.memory_space<vmem>>, %arg2: memref<8x8x128xf32, #tpu.memory_space<vmem>>) attributes {dimension_semantics = [#tpu.dimension_semantics<parallel>], iteration_bounds = array<i64: 2>, scalar_prefetch = 0 : i64, scratch_operands = 0 : i64, tpu.core_type = #tpu.core_type<tc>, window_params = [{transform_indices = @transform_0, window_bounds = array<i64: 8, 8, 128>}, {transform_indices = @transform_1, window_bounds = array<i64: 8, 8, 128>}]} {
    %cst = arith.constant 2.500000e-01 : f32
    %cst_0 = arith.constant 2.000000e-01 : f32
    %c0_i32 = arith.constant 0 : i32
    %c1_i32 = arith.constant 1 : i32
    %0 = arith.muli %c0_i32, %c1_i32 : i32
    %c0_i32_1 = arith.constant 0 : i32
    %1 = arith.addi %c0_i32_1, %0 : i32
    %c8_i32 = arith.constant 8 : i32
    %2 = arith.muli %1, %c8_i32 : i32
    %3 = tpu.assume_multiple %2, 8 : i32
    %cst_2 = arith.constant 0.000000e+00 : f32
    %4 = vector.broadcast %cst_2 : f32 to vector<8x128xf32>
    %false = arith.constant false
    %5 = vector.broadcast %false : i1 to vector<8x128xi1>
    %c0_i32_3 = arith.constant 0 : i32
    %6 = arith.index_cast %c0_i32_3 : i32 to index
    %7 = arith.index_cast %3 : i32 to index
    %c0 = arith.constant 0 : index
    %8 = vector.load %arg1[%6, %7, %c0] : memref<8x8x128xf32, #tpu.memory_space<vmem>>, vector<1x8x128xf32>
    %9 = vector.shape_cast %8 : vector<1x8x128xf32> to vector<8x128xf32>
    %10 = vector.broadcast %cst : f32 to vector<8x128xf32>
    %11 = arith.mulf %10, %4 : vector<8x128xf32>
    %12 = arith.addf %11, %9 : vector<8x128xf32>
    %13 = arith.select %5, %9, %12 : vector<8x128xi1>, vector<8x128xf32>
    %14 = vector.broadcast %cst_0 : f32 to vector<8x128xf32>
    %15 = arith.cmpf ogt, %13, %14 : vector<8x128xf32>
    %16 = arith.extui %15 : vector<8x128xi1> to vector<8x128xi32>
    %17 = arith.sitofp %16 : vector<8x128xi32> to vector<8x128xf32>
    %18 = arith.index_cast %c0_i32_3 : i32 to index
    %19 = arith.index_cast %3 : i32 to index
    %c0_4 = arith.constant 0 : index
    %20 = vector.load %arg2[%18, %19, %c0_4] : memref<8x8x128xf32, #tpu.memory_space<vmem>>, vector<1x8x128xf32>
    %21 = vector.shape_cast %20 : vector<1x8x128xf32> to vector<8x128xf32>
    %22 = vector.shape_cast %17 : vector<8x128xf32> to vector<1x8x128xf32>
    tpu.vector_store %arg2[%18, %19, %c0_4], %22 {strides = array<i32>} : memref<8x8x128xf32, #tpu.memory_space<vmem>>, vector<1x8x128xf32>,
    %c1_i32_5 = arith.constant 1 : i32
    %23 = arith.index_cast %c1_i32_5 : i32 to index
    %24 = arith.index_cast %3 : i32 to index
    %c0_6 = arith.constant 0 : index
    %25 = vector.load %arg1[%23, %24, %c0_6] : memref<8x8x128xf32, #tpu.memory_space<vmem>>, vector<1x8x128xf32>
    %26 = vector.shape_cast %25 : vector<1x8x128xf32> to vector<8x128xf32>
    %27 = vector.broadcast %cst : f32 to vector<8x128xf32>
    %28 = arith.mulf %27, %13 : vector<8x128xf32>
    %29 = arith.addf %28, %26 : vector<8x128xf32>
    %30 = arith.select %15, %26, %29 : vector<8x128xi1>, vector<8x128xf32>
    %31 = vector.broadcast %cst_0 : f32 to vector<8x128xf32>
    %32 = arith.cmpf ogt, %30, %31 : vector<8x128xf32>
    %33 = arith.extui %32 : vector<8x128xi1> to vector<8x128xi32>
    %34 = arith.sitofp %33 : vector<8x128xi32> to vector<8x128xf32>
    %35 = arith.index_cast %c1_i32_5 : i32 to index
    %36 = arith.index_cast %3 : i32 to index
    %c0_7 = arith.constant 0 : index
    %37 = vector.load %arg2[%35, %36, %c0_7] : memref<8x8x128xf32, #tpu.memory_space<vmem>>, vector<1x8x128xf32>
    %38 = vector.shape_cast %37 : vector<1x8x128xf32> to vector<8x128xf32>
    %39 = vector.shape_cast %34 : vector<8x128xf32> to vector<1x8x128xf32>
    tpu.vector_store %arg2[%35, %36, %c0_7], %39 {strides = array<i32>} : memref<8x8x128xf32, #tpu.memory_space<vmem>>, vector<1x8x128xf32>,
    %c2_i32 = arith.constant 2 : i32
    %40 = arith.index_cast %c2_i32 : i32 to index
    %41 = arith.index_cast %3 : i32 to index
    %c0_8 = arith.constant 0 : index
    %42 = vector.load %arg1[%40, %41, %c0_8] : memref<8x8x128xf32, #tpu.memory_space<vmem>>, vector<1x8x128xf32>
    %43 = vector.shape_cast %42 : vector<1x8x128xf32> to vector<8x128xf32>
    %44 = vector.broadcast %cst : f32 to vector<8x128xf32>
    %45 = arith.mulf %44, %30 : vector<8x128xf32>
    %46 = arith.addf %45, %43 : vector<8x128xf32>
    %47 = arith.select %32, %43, %46 : vector<8x128xi1>, vector<8x128xf32>
    %48 = vector.broadcast %cst_0 : f32 to vector<8x128xf32>
    %49 = arith.cmpf ogt, %47, %48 : vector<8x128xf32>
    %50 = arith.extui %49 : vector<8x128xi1> to vector<8x128xi32>
    %51 = arith.sitofp %50 : vector<8x128xi32> to vector<8x128xf32>
    %52 = arith.index_cast %c2_i32 : i32 to index
    %53 = arith.index_cast %3 : i32 to index
    %c0_9 = arith.constant 0 : index
    %54 = vector.load %arg2[%52, %53, %c0_9] : memref<8x8x128xf32, #tpu.memory_space<vmem>>, vector<1x8x128xf32>
    %55 = vector.shape_cast %54 : vector<1x8x128xf32> to vector<8x128xf32>
    %56 = vector.shape_cast %51 : vector<8x128xf32> to vector<1x8x128xf32>
    tpu.vector_store %arg2[%52, %53, %c0_9], %56 {strides = array<i32>} : memref<8x8x128xf32, #tpu.memory_space<vmem>>, vector<1x8x128xf32>,
    %c3_i32 = arith.constant 3 : i32
    %57 = arith.index_cast %c3_i32 : i32 to index
    %58 = arith.index_cast %3 : i32 to index
    %c0_10 = arith.constant 0 : index
    %59 = vector.load %arg1[%57, %58, %c0_10] : memref<8x8x128xf32, #tpu.memory_space<vmem>>, vector<1x8x128xf32>
    %60 = vector.shape_cast %59 : vector<1x8x128xf32> to vector<8x128xf32>
    %61 = vector.broadcast %cst : f32 to vector<8x128xf32>
    %62 = arith.mulf %61, %47 : vector<8x128xf32>
    %63 = arith.addf %62, %60 : vector<8x128xf32>
    %64 = arith.select %49, %60, %63 : vector<8x128xi1>, vector<8x128xf32>
    %65 = vector.broadcast %cst_0 : f32 to vector<8x128xf32>
    %66 = arith.cmpf ogt, %64, %65 : vector<8x128xf32>
    %67 = arith.extui %66 : vector<8x128xi1> to vector<8x128xi32>
    %68 = arith.sitofp %67 : vector<8x128xi32> to vector<8x128xf32>
    %69 = arith.index_cast %c3_i32 : i32 to index
    %70 = arith.index_cast %3 : i32 to index
    %c0_11 = arith.constant 0 : index
    %71 = vector.load %arg2[%69, %70, %c0_11] : memref<8x8x128xf32, #tpu.memory_space<vmem>>, vector<1x8x128xf32>
    %72 = vector.shape_cast %71 : vector<1x8x128xf32> to vector<8x128xf32>
    %73 = vector.shape_cast %68 : vector<8x128xf32> to vector<1x8x128xf32>
    tpu.vector_store %arg2[%69, %70, %c0_11], %73 {strides = array<i32>} : memref<8x8x128xf32, #tpu.memory_space<vmem>>, vector<1x8x128xf32>,
    %c4_i32 = arith.constant 4 : i32
    %74 = arith.index_cast %c4_i32 : i32 to index
    %75 = arith.index_cast %3 : i32 to index
    %c0_12 = arith.constant 0 : index
    %76 = vector.load %arg1[%74, %75, %c0_12] : memref<8x8x128xf32, #tpu.memory_space<vmem>>, vector<1x8x128xf32>
    %77 = vector.shape_cast %76 : vector<1x8x128xf32> to vector<8x128xf32>
    %78 = vector.broadcast %cst : f32 to vector<8x128xf32>
    %79 = arith.mulf %78, %64 : vector<8x128xf32>
    %80 = arith.addf %79, %77 : vector<8x128xf32>
    %81 = arith.select %66, %77, %80 : vector<8x128xi1>, vector<8x128xf32>
    %82 = vector.broadcast %cst_0 : f32 to vector<8x128xf32>
    %83 = arith.cmpf ogt, %81, %82 : vector<8x128xf32>
    %84 = arith.extui %83 : vector<8x128xi1> to vector<8x128xi32>
    %85 = arith.sitofp %84 : vector<8x128xi32> to vector<8x128xf32>
    %86 = arith.index_cast %c4_i32 : i32 to index
    %87 = arith.index_cast %3 : i32 to index
    %c0_13 = arith.constant 0 : index
    %88 = vector.load %arg2[%86, %87, %c0_13] : memref<8x8x128xf32, #tpu.memory_space<vmem>>, vector<1x8x128xf32>
    %89 = vector.shape_cast %88 : vector<1x8x128xf32> to vector<8x128xf32>
    %90 = vector.shape_cast %85 : vector<8x128xf32> to vector<1x8x128xf32>
    tpu.vector_store %arg2[%86, %87, %c0_13], %90 {strides = array<i32>} : memref<8x8x128xf32, #tpu.memory_space<vmem>>, vector<1x8x128xf32>,
    %c5_i32 = arith.constant 5 : i32
    %91 = arith.index_cast %c5_i32 : i32 to index
    %92 = arith.index_cast %3 : i32 to index
    %c0_14 = arith.constant 0 : index
    %93 = vector.load %arg1[%91, %92, %c0_14] : memref<8x8x128xf32, #tpu.memory_space<vmem>>, vector<1x8x128xf32>
    %94 = vector.shape_cast %93 : vector<1x8x128xf32> to vector<8x128xf32>
    %95 = vector.broadcast %cst : f32 to vector<8x128xf32>
    %96 = arith.mulf %95, %81 : vector<8x128xf32>
    %97 = arith.addf %96, %94 : vector<8x128xf32>
    %98 = arith.select %83, %94, %97 : vector<8x128xi1>, vector<8x128xf32>
    %99 = vector.broadcast %cst_0 : f32 to vector<8x128xf32>
    %100 = arith.cmpf ogt, %98, %99 : vector<8x128xf32>
    %101 = arith.extui %100 : vector<8x128xi1> to vector<8x128xi32>
    %102 = arith.sitofp %101 : vector<8x128xi32> to vector<8x128xf32>
    %103 = arith.index_cast %c5_i32 : i32 to index
    %104 = arith.index_cast %3 : i32 to index
    %c0_15 = arith.constant 0 : index
    %105 = vector.load %arg2[%103, %104, %c0_15] : memref<8x8x128xf32, #tpu.memory_space<vmem>>, vector<1x8x128xf32>
    %106 = vector.shape_cast %105 : vector<1x8x128xf32> to vector<8x128xf32>
    %107 = vector.shape_cast %102 : vector<8x128xf32> to vector<1x8x128xf32>
    tpu.vector_store %arg2[%103, %104, %c0_15], %107 {strides = array<i32>} : memref<8x8x128xf32, #tpu.memory_space<vmem>>, vector<1x8x128xf32>,
    %c6_i32 = arith.constant 6 : i32
    %108 = arith.index_cast %c6_i32 : i32 to index
    %109 = arith.index_cast %3 : i32 to index
    %c0_16 = arith.constant 0 : index
    %110 = vector.load %arg1[%108, %109, %c0_16] : memref<8x8x128xf32, #tpu.memory_space<vmem>>, vector<1x8x128xf32>
    %111 = vector.shape_cast %110 : vector<1x8x128xf32> to vector<8x128xf32>
    %112 = vector.broadcast %cst : f32 to vector<8x128xf32>
    %113 = arith.mulf %112, %98 : vector<8x128xf32>
    %114 = arith.addf %113, %111 : vector<8x128xf32>
    %115 = arith.select %100, %111, %114 : vector<8x128xi1>, vector<8x128xf32>
    %116 = vector.broadcast %cst_0 : f32 to vector<8x128xf32>
    %117 = arith.cmpf ogt, %115, %116 : vector<8x128xf32>
    %118 = arith.extui %117 : vector<8x128xi1> to vector<8x128xi32>
    %119 = arith.sitofp %118 : vector<8x128xi32> to vector<8x128xf32>
    %120 = arith.index_cast %c6_i32 : i32 to index
    %121 = arith.index_cast %3 : i32 to index
    %c0_17 = arith.constant 0 : index
    %122 = vector.load %arg2[%120, %121, %c0_17] : memref<8x8x128xf32, #tpu.memory_space<vmem>>, vector<1x8x128xf32>
    %123 = vector.shape_cast %122 : vector<1x8x128xf32> to vector<8x128xf32>
    %124 = vector.shape_cast %119 : vector<8x128xf32> to vector<1x8x128xf32>
    tpu.vector_store %arg2[%120, %121, %c0_17], %124 {strides = array<i32>} : memref<8x8x128xf32, #tpu.memory_space<vmem>>, vector<1x8x128xf32>,
    %c7_i32 = arith.constant 7 : i32
    %125 = arith.index_cast %c7_i32 : i32 to index
    %126 = arith.index_cast %3 : i32 to index
    %c0_18 = arith.constant 0 : index
    %127 = vector.load %arg1[%125, %126, %c0_18] : memref<8x8x128xf32, #tpu.memory_space<vmem>>, vector<1x8x128xf32>
    %128 = vector.shape_cast %127 : vector<1x8x128xf32> to vector<8x128xf32>
    %129 = vector.broadcast %cst : f32 to vector<8x128xf32>
    %130 = arith.mulf %129, %115 : vector<8x128xf32>
    %131 = arith.addf %130, %128 : vector<8x128xf32>
    %132 = arith.select %117, %128, %131 : vector<8x128xi1>, vector<8x128xf32>
    %133 = vector.broadcast %cst_0 : f32 to vector<8x128xf32>
    %134 = arith.cmpf ogt, %132, %133 : vector<8x128xf32>
    %135 = arith.extui %134 : vector<8x128xi1> to vector<8x128xi32>
    %136 = arith.sitofp %135 : vector<8x128xi32> to vector<8x128xf32>
    %137 = arith.index_cast %c7_i32 : i32 to index
    %138 = arith.index_cast %3 : i32 to index
    %c0_19 = arith.constant 0 : index
    %139 = vector.load %arg2[%137, %138, %c0_19] : memref<8x8x128xf32, #tpu.memory_space<vmem>>, vector<1x8x128xf32>
    %140 = vector.shape_cast %139 : vector<1x8x128xf32> to vector<8x128xf32>
    %141 = vector.shape_cast %136 : vector<8x128xf32> to vector<1x8x128xf32>
    tpu.vector_store %arg2[%137, %138, %c0_19], %141 {strides = array<i32>} : memref<8x8x128xf32, #tpu.memory_space<vmem>>, vector<1x8x128xf32>,
    %c8_i32_20 = arith.constant 8 : i32
    %c1_i32_21 = arith.constant 1 : i32
    return
  }
  func.func @transform_0(%arg0: i32) -> (i32, i32, i32) {
    %c0_i32 = arith.constant 0 : i32
    %c0_i32_0 = arith.constant 0 : i32
    %c0_i32_1 = arith.constant 0 : i32
    return %c0_i32, %arg0, %c0_i32_0 : i32, i32, i32
  }
  func.func @transform_1(%arg0: i32) -> (i32, i32, i32) {
    %c0_i32 = arith.constant 0 : i32
    %c0_i32_0 = arith.constant 0 : i32
    %c0_i32_1 = arith.constant 0 : i32
    return %c0_i32, %arg0, %c0_i32_0 : i32, i32, i32
  }
}

</mosaic_0001>

<bundles_post_ra>
// kernel: tpu_custom_call.1
= control target key start
LH: loop header
LB: loop body
LE: loop exit
PB: predicated region body
PF: predicated region fallthrough
CT: control target
= control target key end

     0   :  { %6 = vsyncpa [#allocation3], 0  ;;  %s706_s0 = inlined_call_operand.hbm [shape: f32[8,16,128], index: 0, kind: input, shape index: {}]   ;;  %s707_s1 = inlined_call_operand.hbm [shape: f32[8,16,128], index: 1, kind: output, shape index: {}]  }
   0x1   :  { %8 = vsyncpa [#allocation3 + $0x1], 0 }
   0x2   :  { %9 = vsyncpa [#allocation4], 0 }
   0x3   :  { %11 = vsyncpa [#allocation4 + $0x1], 0  ;;  %s521_s6 = smov 0   ;;  %s523_s7 = smov 0  }
   0x4   :  { %s525_s8 = smov 0   ;;  %s527_s9 = smov 0  }
   0x5 LB: > { %s542_s10 = sadd.s32 4294967295, %s500_s9   ;;  %s317_s11 = sadd.s32 4294967294, %s500_s9   ;;  %s500_s9 = sphi %s527_s9, %s721_s9   ;;  %s496_s8 = sphi %s525_s8, %s720_s8   ;;  %s492_s7 = sphi %s523_s7, %s719_s7   ;;  %s488_s6 = sphi %s521_s6, %s718_s6  }
   0x6   : > { %s546_s12 = sadd.s32 1, %s500_s9   ;;  %s24_s13 = sadd.s32 1, %s496_s8 }
   0x7   : > { %s21_s14 = ssub.s32 %s500_s9, %s546_s12  ;;  %p31_p0 = scmp.ne.s32.totalorder %s496_s8, %s492_s7 }
   0x8   : > { %p22_p1 = scmp.eq.s32.totalorder %s21_s14, 0  ;;  %p32_p2 = scmp.eq.s32.totalorder %s500_s9, 0 }
   0x9   : > { %p37_p3 = scmp.ne.s32.totalorder %s492_s7, %s488_s6  ;;  %p38_p4 = scmp.eq.s32.totalorder %s542_s10, 0 }
   0xa   : > { %s558_s15 = scalar_select %p22_p1, %s496_s8, %s24_s13  }
   0xb   : > { %p560_p5 = por %p32_p2, %p31_p0  ;;  %p564_p6 = por %p38_p4, %p37_p3 }
   0xc   : > { %p61_p7 = scmp.eq.s32.totalorder %s542_s10, 1  ;;  %p67_p8 = scmp.eq.s32.totalorder %s317_s11, 1 }
   0xd   : > { %p363_p10 = scmp.lt.s32.totalorder %s500_s9, 2  ;;  %s87_s20 = sand.u32 1, %s496_s8  }
   0xe   : > { %p571_p11 = por %p61_p7, %p31_p0  ;;  %p575_p12 = por %p67_p8, %p37_p3 }
   0xf   : > { %s321_s21 = sshll.u32 %s500_s9, 7  ;;  %s320_s22 = sshll.u32 %s87_s20, 6 }
  0x10   : > { %s711_s18 = scalar_select %p571_p11, 1, 0 }
  0x11   : > { %s712_s19 = scalar_select %p575_p12, 1, 0 }
  0x12   : > { %s584_s25 = scalar_lea.hbm %s706_s0, %s321_s21  ;;  %s91_s26 = scalar_lea.vmem [#allocation2], %s320_s22 }
  0x13   : > { %s97_s27 = sshll.u32 %s91_s26, 4  ;;  %p588_p13 = pnand %p363_p10, %p560_p5  ;;  %s592_s27 = int_to_ptr.vmem [resolvable:$true] %s97_s27 }
  0x14   : > { %s595_s29 = scalar_lea.sflag [#allocation3], %s87_s20  ;;  %s404_s30 = scalar_lea.hbm %s584_s25, 1024 }
  0x15   : > { %p405_p1 = scmp.ne.s32.totalorder %s584_s25, %s404_s30  ;;  %p406_p2 = pneg %p588_p13 }
  0x16   : > { %s409_s4 = scalar_lea.hbm %s706_s0, 2048  ;;  %p410_p5 = scmp.lt.u32.totalorder %s584_s25, %s706_s0 }
  0x17   : > { %p407_p3 = pnand %p406_p2, %p405_p1  ;;  %p411_p7 = scmp.lt.u32.totalorder %s409_s4, %s404_s30 }
  0x18   : > { %p413_p10 = scmp.lt.u32.totalorder %s404_s30, %s584_s25 }
  0x19   : > { %p408_p4 = pneg %p407_p3  ;;  %p412_p8 = por %p411_p7, %p410_p5 }
  0x1b   : > { %p414_p9 = por %p413_p10, %p412_p8 }
  0x1d   : > { %p415_p0 = pnand %p414_p9, %p408_p4 }
  0x1f   : > { %418 = shalt.err (!%p415_p0)
}
  0x20   : > { %s419_s13 = scalar_lea.vmem %s592_s27, 1024  ;;  %s502_s14 = smov [#allocation2]  }
  0x21   : > { %p420_p1 = scmp.ne.s32.totalorder %s592_s27, %s419_s13  ;;  %s424_s16 = sshll.u32 %s502_s14, 4  ;;  %s425_s16 = int_to_ptr.vmem [resolvable:$false] %s424_s16 }
  0x22   : > { %s426_s20 = scalar_lea.vmem %s425_s16, 2048  ;;  %p427_p11 = scmp.lt.s32.totalorder %s592_s27, %s425_s16 }
  0x23   : > { %p422_p3 = pnand %p420_p1, %p406_p2  ;;  %p428_p5 = scmp.lt.s32.totalorder %s426_s20, %s419_s13 }
  0x25   : > { %p423_p12 = pneg %p422_p3  ;;  %p429_p7 = por %p428_p5, %p427_p11 }
  0x27   : > { %p430_p8 = pnand %p429_p7, %p423_p12 }
  0x29   : > { %433 = shalt.err (!%p430_p8)
}
  0x2a   : > { %s503_s21 = smov 256   ;;  %s504_s22 = smov 128  }
  0x2b   : > { %s505_s23 = smov 8   ;;  %p105_p9 = scmp.lt.s32.totalorder %s500_s9, 3 }
  0x2c   : > { %358 = dma.hbm_to_vmem [thread:$0]  (!%p588_p13), %s584_s25, 1024, %s592_s27, %s595_s29, %s503_s21, %s504_s22, %s505_s23  }
  0x2d   : > { %p714_p0 = scmp.ge.s32.totalorder %s500_s9, 1 }
  0x2f   : > { %p106_p2 = pnand %p714_p0, %p105_p9 }
  0x30   : > { %s627_s24 = sand.u32 (!%p106_p2), 1, %s492_s7  }
  0x31   : > { %109 = sbr.rel (%p106_p2) target bundleno = 111 (0x6f), region = 24  ;;  %s323_s26 = sshll.u32 (!%p106_p2), %s627_s24, 6 }
  0x32   : > { %s112_s30 = scalar_lea.sflag (!%p106_p2), [#allocation3], %s627_s24  ;;  %s631_s2 = scalar_lea.vmem (!%p106_p2), [#allocation2], %s323_s26 }
  0x38   : > { %479 = dma.done.wait (%p564_p6), %s112_s30, 1024  }
  0x39   : > { %481 = vsyncadd (%p564_p6), %s112_s30, 4294966272  ;;  %v134_v0 = vld [vmem:[%s631_s2] sm:$0xff]  ;;  %v326_v1 = vld [vmem:[%s631_s2 + $0x8] sm:$0xff]  ;;  %v506_v3 = vmov 0.0   ;;  %s639_s25 = scalar_lea.vmem [#allocation5], %s323_s26  ;;  %s348_s27 = sshll.u32 %s542_s10, 7 }
  0x3a   : > { %vm136_vm0 = vcmp.gt.f32.partialorder %v134_v0, 0.2  ;;  %v143_v2 = vmul.f32 0.25, %v134_v0  ;;  %v329_v7 = vld [vmem:[%s631_s2 + $0x10] sm:$0xff]  ;;  %v332_v12 = vld [vmem:[%s631_s2 + $0x18] sm:$0xff]  ;;  %v335_v17 = vld [vmem:[%s631_s2 + $0x20] sm:$0xff]  ;;  %s661_s3 = scalar_lea.hbm %s707_s1, %s348_s27 }
  0x3b   : > { %v325_v4 = vsel %vm136_vm0, 1.0, %v506_v3  ;;  %v338_v22 = vld [vmem:[%s631_s2 + $0x28] sm:$0xff]  ;;  %v341_v27 = vld [vmem:[%s631_s2 + $0x30] sm:$0xff]  ;;  %v344_v32 = vld [vmem:[%s631_s2 + $0x38] sm:$0xff]  ;;  %s230_s17 = sshll.u32 %s639_s25, 4  ;;  %s218_s4 = scalar_lea.sflag [#allocation4], %s627_s24  ;;  %s656_s17 = int_to_ptr.vmem [resolvable:$true] %s230_s17 }
  0x3c   : > { %139 = vst [vmem:[%s639_s25] sm:$0xff] %v325_v4  ;;  %v144_v5 = vadd.f32 %v326_v1, %v143_v2  ;;  %s434_s5 = scalar_lea.vmem %s656_s17, 1024  ;;  %p715_p11 = scmp.ne.s32.totalorder %s711_s18, 0 }
  0x3d   : > { %p435_p6 = scmp.ne.s32.totalorder %s656_s17, %s434_s5  ;;  %s507_s10 = smov [#allocation5]  }
  0x3e   : > { %v145_v6 = vsel %vm136_vm0, %v326_v1, %v144_v5  ;;  %s438_s11 = sshll.u32 %s507_s10, 4  ;;  %s439_s11 = int_to_ptr.vmem [resolvable:$false] %s438_s11 }
  0x3f   : > { %vm146_vm1 = vcmp.gt.f32.partialorder %v145_v6, 0.2  ;;  %v154_v8 = vmul.f32 0.25, %v145_v6  ;;  %p436_p12 = pnand %p435_p6, %p715_p11  ;;  %s440_s13 = scalar_lea.vmem %s439_s11, 2048 }
  0x40   : > { %v327_v9 = vsel %vm146_vm1, 1.0, %v506_v3  ;;  %p441_p4 = scmp.lt.s32.totalorder %s656_s17, %s439_s11  ;;  %p442_p10 = scmp.lt.s32.totalorder %s440_s13, %s434_s5 }
  0x41   : > { %328 = vst [vmem:[%s639_s25 + $0x8] sm:$0xff] %v327_v9  ;;  %v155_v10 = vadd.f32 %v329_v7, %v154_v8  ;;  %p437_p13 = pneg %p436_p12 }
  0x42   : > { %p443_p1 = por %p442_p10, %p441_p4 }
  0x43   : > { %v156_v11 = vsel %vm146_vm1, %v329_v7, %v155_v10 }
  0x44   : > { %vm157_vm2 = vcmp.gt.f32.partialorder %v156_v11, 0.2  ;;  %v165_v13 = vmul.f32 0.25, %v156_v11  ;;  %p444_p3 = pnand %p443_p1, %p437_p13 }
  0x45   : > { %v330_v14 = vsel %vm157_vm2, 1.0, %v506_v3 }
  0x46   : > { %331 = vst [vmem:[%s639_s25 + $0x10] sm:$0xff] %v330_v14  ;;  %v166_v15 = vadd.f32 %v332_v12, %v165_v13 }
  0x48   : > { %v167_v16 = vsel %vm157_vm2, %v332_v12, %v166_v15 }
  0x49   : > { %vm168_vm3 = vcmp.gt.f32.partialorder %v167_v16, 0.2  ;;  %v176_v18 = vmul.f32 0.25, %v167_v16 }
  0x4a   : > { %v333_v19 = vsel %vm168_vm3, 1.0, %v506_v3 }
  0x4b   : > { %334 = vst [vmem:[%s639_s25 + $0x18] sm:$0xff] %v333_v19  ;;  %v177_v20 = vadd.f32 %v335_v17, %v176_v18 }
  0x4d   : > { %v178_v21 = vsel %vm168_vm3, %v335_v17, %v177_v20 }
  0x4e   : > { %vm179_vm4 = vcmp.gt.f32.partialorder %v178_v21, 0.2  ;;  %v187_v23 = vmul.f32 0.25, %v178_v21 }
  0x4f   : > { %v336_v24 = vsel %vm179_vm4, 1.0, %v506_v3 }
  0x50   : > { %337 = vst [vmem:[%s639_s25 + $0x20] sm:$0xff] %v336_v24  ;;  %v188_v25 = vadd.f32 %v338_v22, %v187_v23 }
  0x52   : > { %v189_v26 = vsel %vm179_vm4, %v338_v22, %v188_v25 }
  0x53   : > { %vm190_vm5 = vcmp.gt.f32.partialorder %v189_v26, 0.2  ;;  %v198_v28 = vmul.f32 0.25, %v189_v26 }
  0x54   : > { %v339_v29 = vsel %vm190_vm5, 1.0, %v506_v3 }
  0x55   : > { %340 = vst [vmem:[%s639_s25 + $0x28] sm:$0xff] %v339_v29  ;;  %v199_v30 = vadd.f32 %v341_v27, %v198_v28 }
  0x57   : > { %v200_v31 = vsel %vm190_vm5, %v341_v27, %v199_v30 }
  0x58   : > { %vm201_vm6 = vcmp.gt.f32.partialorder %v200_v31, 0.2  ;;  %v209_v33 = vmul.f32 0.25, %v200_v31 }
  0x59   : > { %v342_v34 = vsel %vm201_vm6, 1.0, %v506_v3 }
  0x5a   : > { %343 = vst [vmem:[%s639_s25 + $0x30] sm:$0xff] %v342_v34  ;;  %v210_v35 = vadd.f32 %v344_v32, %v209_v33 }
  0x5c   : > { %v211_v36 = vsel %vm201_vm6, %v344_v32, %v210_v35 }
  0x5d   : > { %vm212_vm7 = vcmp.gt.f32.partialorder %v211_v36, 0.2 }
  0x5e   : > { %v345_v37 = vsel %vm212_vm7, 1.0, %v506_v3 }
  0x5f   : > { %346 = vst [vmem:[%s639_s25 + $0x38] sm:$0xff] %v345_v37 }
  0x60   : > { %447 = shalt.err (!%p444_p3)
}
  0x61   : > { %s448_s14 = scalar_lea.hbm %s661_s3, 1024  ;;  %s452_s21 = scalar_lea.hbm %s707_s1, 2048 }
  0x62   : > { %p449_p5 = scmp.ne.s32.totalorder %s661_s3, %s448_s14  ;;  %p453_p9 = scmp.lt.u32.totalorder %s661_s3, %s707_s1 }
  0x63   : > { %p454_p0 = scmp.lt.u32.totalorder %s452_s21, %s448_s14  ;;  %p456_p6 = scmp.lt.u32.totalorder %s448_s14, %s661_s3 }
  0x64   : > { %p450_p7 = pnand %p449_p5, %p715_p11 }
  0x65   : > { %p455_p2 = por %p454_p0, %p453_p9 }
  0x66   : > { %p451_p8 = pneg %p450_p7 }
  0x67   : > { %p457_p12 = por %p456_p6, %p455_p2 }
  0x69   : > { %p458_p13 = pnand %p457_p12, %p451_p8 }
  0x6b   : > { %461 = shalt.err (!%p458_p13)
}
  0x6c   : > { %s508_s26 = smov 128   ;;  %s509_s30 = smov 256  }
  0x6d   : > { %s510_s2 = smov 8  }
  0x6e   : > { %353 = dma.vmem_to_hbm [thread:$0]  (%p715_p11), %s656_s17, 1024, %s661_s3, %s218_s4, %s508_s26, %s509_s30, %s510_s2  }
  0x6f PF: > { %s245_s25 = sand.u32 1, %s488_s6   ;;  %p716_p4 = scmp.ne.s32.totalorder %s712_s19, 0 }
  0x70   : > { %p717_p10 = scmp.ge.s32.totalorder %s500_s9, 2  ;;  %s246_s27 = scalar_lea.sflag [#allocation4], %s245_s25 }
  0x72   : > { %p360_p1 = pnand %p717_p10, %p716_p4 }
  0x74   : > { %483 = dma.done.wait (!%p360_p1), %s246_s27, 1024  }
  0x75   : > { %485 = vsyncadd (!%p360_p1), %s246_s27, 4294966272  ;;  %p14_p3 = scmp.ge.s32.totalorder %s546_s12, 4   ;;  %s718_s6 = smov %s492_s7 }
  0x76   : > { %s719_s7 = smov %s496_s8  ;;  %s720_s8 = smov %s558_s15 }
  0x77   : > { %s721_s9 = smov %s546_s12  ;;  %16 = sbr.rel (!%p14_p3) target bundleno = 5 (0x5), region = 83 }
  0x7e   :  { %251 = vsyncpa [#allocation3], 1 }
  0x7f   :  { %253 = vsyncpa [#allocation3 + $0x1], 1 }
  0x80   :  { %254 = vsyncpa [#allocation4], 1 }
  0x81   :  { %256 = vsyncpa [#allocation4 + $0x1], 1 }

</bundles_post_ra>
